<compile_context>
chip_gen: v7x
topology: tpu7x:2x2x1
jax: 0.10.0
libtpu: 0.0.40
codegen_flags: <defaults>
</compile_context>

<pallas_src>
import functools

import jax
import jax.numpy as jnp
from jax.experimental import pallas as pl
from jax.experimental.pallas import tpu as pltpu


def _round_up(x, m):
    return ((x + m - 1) // m) * m


def critic_kernel(x_ref, w1_ref, b1_ref, w2_ref, b2_ref, w3_ref, b3_ref, o_ref):
    compute_dtype = w2_ref.dtype

    # Layer 1: relu(x @ W1 + b1) -- single fused matmul (concat folded outside).
    h1 = jnp.dot(x_ref[...], w1_ref[...], preferred_element_type=jnp.float32)
    h1 = jnp.maximum(h1 + b1_ref[...], 0.0)          # bias + ReLU in f32
    h1 = h1.astype(compute_dtype)

    # Layer 2: relu(h1 @ W2 + b2)
    h2 = jnp.dot(h1, w2_ref[...], preferred_element_type=jnp.float32)
    h2 = jnp.maximum(h2 + b2_ref[...], 0.0)
    h2 = h2.astype(compute_dtype)

    # Layer 3: h2 @ W3 + b3 (no activation); W3/b3 are column-padded to 128
    # lanes so this store is lane-dense.
    # NOTE: if H >= 512 or TB is pushed large, stage h1/h2 in VMEM scratch to
    # bound register pressure; unnecessary at these sizes.
    o_ref[...] = (jnp.dot(h2, w3_ref[...], preferred_element_type=jnp.float32)
                  + b3_ref[...]).astype(o_ref.dtype)


@functools.partial(jax.jit, static_argnames=("block_b", "compute_dtype"))
def critic_forward(state, action, params, *, block_b=256,
                   compute_dtype=jnp.bfloat16):
    """state: (B, Ds), action: (B, Da). Returns (B, out) in float32."""
    w1, b1, w2, b2, w3, b3 = params
    B = state.shape[0]
    K = w1.shape[0]            # input_size = Ds + Da
    H = w1.shape[1]
    O = w3.shape[1]

    # Fused concat: layer 1 consumes the concatenated features directly.
    x = jnp.concatenate([state, action], axis=1)

    # Lane-dense feature padding (multiple of 128) and batch tiling
    # (sublane-friendly multiple of 16 -> valid for both f32 and bf16 tiles).
    Hp = _round_up(H, 128)
    Op = _round_up(O, 128)
    TB = min(block_b, _round_up(B, 16))
    Bp = _round_up(B, TB)

    f32 = jnp.float32
    x_p = jnp.pad(x, ((0, Bp - B), (0, 0))).astype(compute_dtype)
    w1_p = jnp.pad(w1, ((0, 0), (0, Hp - H))).astype(compute_dtype)
    b1_p = jnp.pad(b1.reshape(1, H), ((0, 0), (0, Hp - H))).astype(f32)
    w2_p = jnp.pad(w2, ((0, Hp - H), (0, Hp - H))).astype(compute_dtype)
    b2_p = jnp.pad(b2.reshape(1, H), ((0, 0), (0, Hp - H))).astype(f32)
    w3_p = jnp.pad(w3, ((0, Hp - H), (0, Op - O))).astype(compute_dtype)
    b3_p = jnp.pad(b3.reshape(1, O), ((0, 0), (0, Op - O))).astype(f32)

    grid = (Bp // TB,)

    # VMEM budget: 2x double-buffered activation/output tiles + resident
    # weights/biases + intermediate headroom. Clamped to 32 MiB, which is safe
    # on v5e/v6e (128 MiB physical) and v7x (64 MiB physical).
    cd_bytes = jnp.dtype(compute_dtype).itemsize
    need = (2 * TB * K * cd_bytes                      # x tiles (double-buffered)
            + 2 * TB * Op * 4                          # output tiles
            + (K * Hp + Hp * Hp + Hp * Op) * cd_bytes  # resident weights
            + (2 * Hp + Op) * 4                        # biases
            + 2 * TB * Hp * 4)                         # h1/h2 headroom
    vmem_bytes = int(min(max(2 * need, 8 << 20), 32 << 20))

    out_padded = pl.pallas_call(
        critic_kernel,
        out_shape=jax.ShapeDtypeStruct((Bp, Op), jnp.float32),
        grid_spec=pltpu.PrefetchScalarGridSpec(
            num_scalar_prefetch=0,
            grid=grid,
            in_specs=[
                pl.BlockSpec((TB, K), lambda i: (i, 0)),    # x: row-tiled
                pl.BlockSpec((K, Hp), lambda i: (0, 0)),    # W1: resident
                pl.BlockSpec((1, Hp), lambda i: (0, 0)),    # b1
                pl.BlockSpec((Hp, Hp), lambda i: (0, 0)),   # W2
                pl.BlockSpec((1, Hp), lambda i: (0, 0)),    # b2
                pl.BlockSpec((Hp, Op), lambda i: (0, 0)),   # W3
                pl.BlockSpec((1, Op), lambda i: (0, 0)),    # b3
            ],
            out_specs=pl.BlockSpec((TB, Op), lambda i: (i, 0)),
        ),
        compiler_params=pltpu.CompilerParams(
            dimension_semantics=("parallel",),   # shard batch tiles on v7x 2xTC
            vmem_limit_bytes=vmem_bytes,
        ),
    )(x_p, w1_p, b1_p, w2_p, b2_p, w3_p, b3_p)

    # Drop batch padding and the lane-padding of the output dim.
    return out_padded[:B, :O]


def init_params(key, input_size, hidden_size, output_size):
    """Deterministic init mimicking PyTorch nn.Linear (uniform +-1/sqrt(fan_in)).

    Weights are stored (in_features, out_features) so the kernel computes x @ W + b.
    """
    ks = jax.random.split(key, 6)

    def unif(k, shape, fan_in):
        bound = 1.0 / jnp.sqrt(jnp.float32(fan_in))
        return jax.random.uniform(k, shape, jnp.float32, -bound, bound)

    w1 = unif(ks[0], (input_size, hidden_size), input_size)
    b1 = unif(ks[1], (hidden_size,), input_size)
    w2 = unif(ks[2], (hidden_size, hidden_size), hidden_size)
    b2 = unif(ks[3], (hidden_size,), hidden_size)
    w3 = unif(ks[4], (hidden_size, output_size), hidden_size)
    b3 = unif(ks[5], (output_size,), hidden_size)
    return (w1, b1, w2, b2, w3, b3)


def critic_reference(state, action, params):
    """Pure-JAX f32 reference (matches the PyTorch module semantics)."""
    w1, b1, w2, b2, w3, b3 = params
    x = jnp.concatenate([state, action], axis=1)
    h1 = jax.nn.relu(x @ w1 + b1.reshape(1, -1))
    h2 = jax.nn.relu(h1 @ w2 + b2.reshape(1, -1))
    return h2 @ w3 + b3.reshape(1, -1)


if __name__ == "__main__":
    key = jax.random.PRNGKey(0)
    k_s, k_a, k_p = jax.random.split(key, 3)

    # Small, forward-consistent shapes: batch=2, state_dim=12, action_dim=4,
    # hidden_size=32, output_size=1  (input_size = 16).
    B, Ds, Da, H, O = 2, 12, 4, 32, 1

    state = jax.random.normal(k_s, (B, Ds), jnp.float32)
    action = jax.random.normal(k_a, (B, Da), jnp.float32)
    params = init_params(k_p, Ds + Da, H, O)

    ref = critic_reference(state, action, params)

    # f32 compute path: tight check against the reference.
    out_f32 = jax.block_until_ready(
        critic_forward(state, action, params, compute_dtype=jnp.float32))
    assert out_f32.shape == (B, O)
    assert jnp.allclose(out_f32, ref, atol=1e-5, rtol=1e-5)

    # bf16 MXU path (recommended default on v6e/v7x): looser tolerance.
    out_bf16 = jax.block_until_ready(
        critic_forward(state, action, params, compute_dtype=jnp.bfloat16))
    assert out_bf16.shape == (B, O)
    assert jnp.allclose(out_bf16, ref, atol=3e-2, rtol=3e-2)

    print("KERNEL_OK")
</pallas_src>

<mosaic_0001>
module attributes {stable_mosaic.version = 11 : i64} {
  func.func @critic_kernel(%arg0: i32, %arg1: memref<16x16xf32, #tpu.memory_space<vmem>>, %arg2: memref<16x128xf32, #tpu.memory_space<vmem>>, %arg3: memref<1x128xf32, #tpu.memory_space<vmem>>, %arg4: memref<128x128xf32, #tpu.memory_space<vmem>>, %arg5: memref<1x128xf32, #tpu.memory_space<vmem>>, %arg6: memref<128x128xf32, #tpu.memory_space<vmem>>, %arg7: memref<1x128xf32, #tpu.memory_space<vmem>>, %arg8: memref<16x128xf32, #tpu.memory_space<vmem>>) attributes {dimension_semantics = [#tpu.dimension_semantics<parallel>], iteration_bounds = array<i64: 1>, scalar_prefetch = 0 : i64, scratch_operands = 0 : i64, tpu.core_type = #tpu.core_type<tc>, window_params = [{transform_indices = @transform_0, window_bounds = array<i64: 16, 16>}, {pipeline_mode = #tpu.pipeline_mode<synchronous>, transform_indices = @transform_1, window_bounds = array<i64: 16, 128>}, {pipeline_mode = #tpu.pipeline_mode<synchronous>, transform_indices = @transform_2, window_bounds = array<i64: 1, 128>}, {pipeline_mode = #tpu.pipeline_mode<synchronous>, transform_indices = @transform_3, window_bounds = array<i64: 128, 128>}, {pipeline_mode = #tpu.pipeline_mode<synchronous>, transform_indices = @transform_4, window_bounds = array<i64: 1, 128>}, {pipeline_mode = #tpu.pipeline_mode<synchronous>, transform_indices = @transform_5, window_bounds = array<i64: 128, 128>}, {pipeline_mode = #tpu.pipeline_mode<synchronous>, transform_indices = @transform_6, window_bounds = array<i64: 1, 128>}, {transform_indices = @transform_7, window_bounds = array<i64: 16, 128>}]} {
    %c0 = arith.constant 0 : index
    %c0_0 = arith.constant 0 : index
    %0 = vector.load %arg1[%c0, %c0_0] : memref<16x16xf32, #tpu.memory_space<vmem>>, vector<16x16xf32>
    %c0_1 = arith.constant 0 : index
    %c0_2 = arith.constant 0 : index
    %1 = vector.load %arg2[%c0_1, %c0_2] : memref<16x128xf32, #tpu.memory_space<vmem>>, vector<16x128xf32>
    %cst = arith.constant dense<0.000000e+00> : vector<16x128xf32>
    %2 = tpu.matmul %0, %1, %cst {dimension_numbers = #tpu.dot_dimension_numbers<[1], [0], [0], [1], [0, 0, 1, 1], [], []>} : vector<16x16xf32>, vector<16x128xf32>, vector<16x128xf32> -> vector<16x128xf32>
    %c0_3 = arith.constant 0 : index
    %c0_4 = arith.constant 0 : index
    %3 = vector.load %arg3[%c0_3, %c0_4] : memref<1x128xf32, #tpu.memory_space<vmem>>, vector<1x128xf32>
    %4 = vector.broadcast %3 : vector<1x128xf32> to vector<16x128xf32>
    %5 = arith.addf %2, %4 : vector<16x128xf32>
    %cst_5 = arith.constant 0.000000e+00 : f32
    %6 = vector.broadcast %cst_5 : f32 to vector<16x128xf32>
    %7 = arith.maximumf %5, %6 : vector<16x128xf32>
    %c0_6 = arith.constant 0 : index
    %c0_7 = arith.constant 0 : index
    %8 = vector.load %arg4[%c0_6, %c0_7] : memref<128x128xf32, #tpu.memory_space<vmem>>, vector<128x128xf32>
    %cst_8 = arith.constant dense<0.000000e+00> : vector<16x128xf32>
    %9 = tpu.matmul %7, %8, %cst_8 {dimension_numbers = #tpu.dot_dimension_numbers<[1], [0], [0], [1], [0, 0, 1, 1], [], []>} : vector<16x128xf32>, vector<128x128xf32>, vector<16x128xf32> -> vector<16x128xf32>
    %c0_9 = arith.constant 0 : index
    %c0_10 = arith.constant 0 : index
    %10 = vector.load %arg5[%c0_9, %c0_10] : memref<1x128xf32, #tpu.memory_space<vmem>>, vector<1x128xf32>
    %11 = vector.broadcast %10 : vector<1x128xf32> to vector<16x128xf32>
    %12 = arith.addf %9, %11 : vector<16x128xf32>
    %cst_11 = arith.constant 0.000000e+00 : f32
    %13 = vector.broadcast %cst_11 : f32 to vector<16x128xf32>
    %14 = arith.maximumf %12, %13 : vector<16x128xf32>
    %c0_12 = arith.constant 0 : index
    %c0_13 = arith.constant 0 : index
    %15 = vector.load %arg6[%c0_12, %c0_13] : memref<128x128xf32, #tpu.memory_space<vmem>>, vector<128x128xf32>
    %cst_14 = arith.constant dense<0.000000e+00> : vector<16x128xf32>
    %16 = tpu.matmul %14, %15, %cst_14 {dimension_numbers = #tpu.dot_dimension_numbers<[1], [0], [0], [1], [0, 0, 1, 1], [], []>} : vector<16x128xf32>, vector<128x128xf32>, vector<16x128xf32> -> vector<16x128xf32>
    %c0_15 = arith.constant 0 : index
    %c0_16 = arith.constant 0 : index
    %17 = vector.load %arg7[%c0_15, %c0_16] : memref<1x128xf32, #tpu.memory_space<vmem>>, vector<1x128xf32>
    %18 = vector.broadcast %17 : vector<1x128xf32> to vector<16x128xf32>
    %19 = arith.addf %16, %18 : vector<16x128xf32>
    %c0_17 = arith.constant 0 : index
    %c0_18 = arith.constant 0 : index
    %20 = vector.load %arg8[%c0_17, %c0_18] : memref<16x128xf32, #tpu.memory_space<vmem>>, vector<16x128xf32>
    tpu.vector_store %arg8[%c0_17, %c0_18], %19 {strides = array<i32>} : memref<16x128xf32, #tpu.memory_space<vmem>>, vector<16x128xf32>,
    return
  }
  func.func @transform_0(%arg0: i32) -> (i32, i32) {
    %c0_i32 = arith.constant 0 : i32
    %c0_i32_0 = arith.constant 0 : i32
    return %arg0, %c0_i32 : i32, i32
  }
  func.func @transform_1(%arg0: i32) -> (i32, i32) {
    %c0_i32 = arith.constant 0 : i32
    %c0_i32_0 = arith.constant 0 : i32
    %c0_i32_1 = arith.constant 0 : i32
    return %c0_i32, %c0_i32_0 : i32, i32
  }
  func.func @transform_2(%arg0: i32) -> (i32, i32) {
    %c0_i32 = arith.constant 0 : i32
    %c0_i32_0 = arith.constant 0 : i32
    %c0_i32_1 = arith.constant 0 : i32
    return %c0_i32, %c0_i32_0 : i32, i32
  }
  func.func @transform_3(%arg0: i32) -> (i32, i32) {
    %c0_i32 = arith.constant 0 : i32
    %c0_i32_0 = arith.constant 0 : i32
    %c0_i32_1 = arith.constant 0 : i32
    return %c0_i32, %c0_i32_0 : i32, i32
  }
  func.func @transform_4(%arg0: i32) -> (i32, i32) {
    %c0_i32 = arith.constant 0 : i32
    %c0_i32_0 = arith.constant 0 : i32
    %c0_i32_1 = arith.constant 0 : i32
    return %c0_i32, %c0_i32_0 : i32, i32
  }
  func.func @transform_5(%arg0: i32) -> (i32, i32) {
    %c0_i32 = arith.constant 0 : i32
    %c0_i32_0 = arith.constant 0 : i32
    %c0_i32_1 = arith.constant 0 : i32
    return %c0_i32, %c0_i32_0 : i32, i32
  }
  func.func @transform_6(%arg0: i32) -> (i32, i32) {
    %c0_i32 = arith.constant 0 : i32
    %c0_i32_0 = arith.constant 0 : i32
    %c0_i32_1 = arith.constant 0 : i32
    return %c0_i32, %c0_i32_0 : i32, i32
  }
  func.func @transform_7(%arg0: i32) -> (i32, i32) {
    %c0_i32 = arith.constant 0 : i32
    %c0_i32_0 = arith.constant 0 : i32
    return %arg0, %c0_i32 : i32, i32
  }
}

</mosaic_0001>

<bundles_post_ra>
// kernel: critic_forward.1
= control target key start
LH: loop header
LB: loop body
LE: loop exit
PB: predicated region body
PF: predicated region fallthrough
CT: control target
= control target key end

     0   :  { %vm37_vm0 = vcmask 130048   ;;  %s680_s1 = inlined_call_operand.vmem [shape: f32[16,128], index: 1, kind: input, shape index: {}]   ;;  %s681_s0 = inlined_call_operand.vmem [shape: f32[16,16], index: 0, kind: input, shape index: {}]   ;;  %s682_s3 = inlined_call_operand.vmem [shape: f32[128,128], index: 3, kind: input, shape index: {}]   ;;  %s683_s5 = inlined_call_operand.vmem [shape: f32[128,128], index: 5, kind: input, shape index: {}]   ;;  %s684_s2 = inlined_call_operand.vmem [shape: f32[1,128], index: 2, kind: input, shape index: {}]   ;;  %s685_s4 = inlined_call_operand.vmem [shape: f32[1,128], index: 4, kind: input, shape index: {}]   ;;  %s686_s6 = inlined_call_operand.vmem [shape: f32[1,128], index: 6, kind: input, shape index: {}]   ;;  %s687_s7 = inlined_call_operand.vmem [shape: f32[16,128], index: 7, kind: output, shape index: {}]  }
   0x1   :  { %v28_v0 = vld [vmem:[%s680_s1] sm:$0xff]  ;;  %v29_v1 = vld [vmem:[%s680_s1 + $0x8] sm:$0xff]  ;;  %v123_v7 = vld [vmem:[%s682_s3 + $0x10] sm:$0xff] }
   0x2   :  { %v26_v2 = vld [vmem:[%s681_s0] sm:$0xff]  ;;  %v447_v3 = vpack.c.bf16 %v29_v1, %v28_v0  ;;  %v122_v5 = vld [vmem:[%s682_s3 + $0x8] sm:$0xff]  ;;  %v124_v8 = vld [vmem:[%s682_s3 + $0x18] sm:$0xff] }
   0x3   :  { %374 = vmatprep.mubr.msk.f32.mxu0 %vm37_vm0, %v26_v2  ;;  %v121_v4 = vld [vmem:[%s682_s3] sm:$0xff]  ;;  %v455_v9 = vpack.c.bf16 %v124_v8, %v123_v7  ;;  %v126_v11 = vld [vmem:[%s682_s3 + $0x28] sm:$0xff]  ;;  %v127_v14 = vld [vmem:[%s682_s3 + $0x30] sm:$0xff] }
   0x4   :  { %v451_v6 = vpack.c.bf16 %v122_v5, %v121_v4  ;;  %448 = vmatprep.subr.bf16.mxu0 %v447_v3  ;;  %v125_v10 = vld [vmem:[%s682_s3 + $0x20] sm:$0xff]  ;;  %v27_v12 = vld [vmem:[%s681_s0 + $0x8] sm:$0xff]  ;;  %v128_v15 = vld [vmem:[%s682_s3 + $0x38] sm:$0xff] }
   0x5   :  { %450 = vmatpush3.bf16.msra.mxu0 %v447_v3  ;;  %v459_v13 = vpack.c.bf16 %v126_v11, %v125_v10  ;;  %v463_v16 = vpack.c.bf16 %v128_v15, %v127_v14  ;;  %v129_v17 = vld [vmem:[%s682_s3 + $0x40] sm:$0xff]  ;;  %v130_v18 = vld [vmem:[%s682_s3 + $0x48] sm:$0xff]  ;;  %v131_v20 = vld [vmem:[%s682_s3 + $0x50] sm:$0xff] }
   0x6   :  { %452 = vmatprep.subr.bf16.mxu1 %v451_v6  ;;  %v467_v19 = vpack.c.bf16 %v130_v18, %v129_v17  ;;  %v132_v21 = vld [vmem:[%s682_s3 + $0x58] sm:$0xff]  ;;  %v133_v23 = vld [vmem:[%s682_s3 + $0x60] sm:$0xff]  ;;  %v134_v24 = vld [vmem:[%s682_s3 + $0x68] sm:$0xff] }
   0x7   :  { %454 = vmatpush3.bf16.msra.mxu1 %v451_v6  ;;  %v471_v22 = vpack.c.bf16 %v132_v21, %v131_v20  ;;  %v475_v25 = vpack.c.bf16 %v134_v24, %v133_v23  ;;  %v135_v26 = vld [vmem:[%s682_s3 + $0x70] sm:$0xff]  ;;  %v136_v27 = vld [vmem:[%s682_s3 + $0x78] sm:$0xff]  ;;  %v221_v29 = vld [vmem:[%s683_s5] sm:$0xff] }
   0x8   :  { %456 = vmatprep.subr.bf16.mxu1 %v455_v9  ;;  %375 = vmatmul.mubr.msk.f32.vlgmr.msra.gmra.mrb[0].mxu0 %vm37_vm0, %v27_v12  ;;  %v479_v28 = vpack.c.bf16 %v136_v27, %v135_v26  ;;  %v222_v30 = vld [vmem:[%s683_s5 + $0x8] sm:$0xff]  ;;  %v223_v31 = vld [vmem:[%s683_s5 + $0x10] sm:$0xff]  ;;  %v224_v33 = vld [vmem:[%s683_s5 + $0x18] sm:$0xff] }
   0x9   :  { %v483_v32 = vpack.c.bf16 %v222_v30, %v221_v29  ;;  %v487_v34 = vpack.c.bf16 %v224_v33, %v223_v31  ;;  %v225_v35 = vld [vmem:[%s683_s5 + $0x20] sm:$0xff]  ;;  %v226_v36 = vld [vmem:[%s683_s5 + $0x28] sm:$0xff]  ;;  %v227_v38 = vld [vmem:[%s683_s5 + $0x30] sm:$0xff] }
   0xa   :  { %v491_v37 = vpack.c.bf16 %v226_v36, %v225_v35  ;;  %v228_v39 = vld [vmem:[%s683_s5 + $0x38] sm:$0xff]  ;;  %v229_v41 = vld [vmem:[%s683_s5 + $0x40] sm:$0xff]  ;;  %v230_v42 = vld [vmem:[%s683_s5 + $0x48] sm:$0xff] }
   0xb   :  { %458 = vmatpush3.bf16.msra.mxu1 %v455_v9  ;;  %484 = vmatprep.subr.bf16.mxu0 %v483_v32  ;;  %v495_v40 = vpack.c.bf16 %v228_v39, %v227_v38  ;;  %v499_v43 = vpack.c.bf16 %v230_v42, %v229_v41  ;;  %v231_v44 = vld [vmem:[%s683_s5 + $0x50] sm:$0xff]  ;;  %v232_v45 = vld [vmem:[%s683_s5 + $0x58] sm:$0xff]  ;;  %v233_v47 = vld [vmem:[%s683_s5 + $0x60] sm:$0xff] }
   0xc   :  { %460 = vmatprep.subr.bf16.mxu1 %v459_v13  ;;  %486 = vmatpush3.bf16.msra.mxu0 %v483_v32  ;;  %v503_v46 = vpack.c.bf16 %v232_v45, %v231_v44  ;;  %v234_v48 = vld [vmem:[%s683_s5 + $0x68] sm:$0xff]  ;;  %v325_v50 = vld [vmem:[%s684_s2] ss:$0 sm:$0xff]  ;;  %v235_v57 = vld [vmem:[%s683_s5 + $0x70] sm:$0xff] }
   0xd   :  { %488 = vmatprep.subr.bf16.mxu0 %v487_v34  ;;  %v507_v49 = vpack.c.bf16 %v234_v48, %v233_v47  ;;  %v236_v58 = vld [vmem:[%s683_s5 + $0x78] sm:$0xff]  ;;  %v328_v60 = vld [vmem:[%s685_s4] ss:$0 sm:$0xff] }
   0xe   :  { %v511_v59 = vpack.c.bf16 %v236_v58, %v235_v57  ;;  %v329_v3 = vld [vmem:[%s686_s6] ss:$0 sm:$0xff] }
   0xf   :  { %462 = vmatpush3.bf16.msra.mxu1 %v459_v13 }
  0x10   :  { %464 = vmatprep.subr.bf16.mxu1 %v463_v16  ;;  %490 = vmatpush3.bf16.msra.mxu0 %v487_v34 }
  0x11   :  { %492 = vmatprep.subr.bf16.mxu0 %v491_v37 }
  0x13   :  { %466 = vmatpush3.bf16.msra.mxu1 %v463_v16 }
  0x14   :  { %468 = vmatprep.subr.bf16.mxu1 %v467_v19  ;;  %494 = vmatpush3.bf16.msra.mxu0 %v491_v37 }
  0x15   :  { %496 = vmatprep.subr.bf16.mxu0 %v495_v40 }
  0x17   :  { %470 = vmatpush3.bf16.msra.mxu1 %v467_v19 }
  0x18   :  { %472 = vmatprep.subr.bf16.mxu1 %v471_v22  ;;  %498 = vmatpush3.bf16.msra.mxu0 %v495_v40 }
  0x19   :  { %500 = vmatprep.subr.bf16.mxu0 %v499_v43 }
  0x1b   :  { %474 = vmatpush3.bf16.msra.mxu1 %v471_v22 }
  0x1c   :  { %476 = vmatprep.subr.bf16.mxu1 %v475_v25  ;;  %502 = vmatpush3.bf16.msra.mxu0 %v499_v43 }
  0x1d   :  { %504 = vmatprep.subr.bf16.mxu0 %v503_v46 }
  0x1f   :  { %478 = vmatpush3.bf16.msra.mxu1 %v475_v25 }
  0x20   :  { %480 = vmatprep.subr.bf16.mxu1 %v479_v28  ;;  %506 = vmatpush3.bf16.msra.mxu0 %v503_v46 }
  0x21   :  { %508 = vmatprep.subr.bf16.mxu0 %v507_v49 }
  0x23   :  { %482 = vmatpush3.bf16.msra.mxu1 %v479_v28 }
  0x24   :  { %510 = vmatpush3.bf16.msra.mxu0 %v507_v49 }
  0x25   :  { %512 = vmatprep.subr.bf16.mxu0 %v511_v59 }
  0x28   :  { %514 = vmatpush3.bf16.msra.mxu0 %v511_v59 }
  0xdb   :  { %v376_v51 = vpop.f32.mrb[0].mxu0 }
  0xdc   :  { %v116_v52 = vadd.f32 %v376_v51, %v325_v50  ;;  %v110_v53 = vpop.f32.mrb[1].mxu0 }
  0xdd   :  { %v111_v54 = vadd.f32 %v325_v50, %v110_v53 }
  0xde   :  { %v120_v56 = vmax.f32 %v116_v52, 0.0 }
  0xdf   :  { %v119_v55 = vmax.f32 %v111_v54, 0.0 }
  0xe1   :  { %409 = vmatprep.mubr.f32.mxu1 %v119_v55 }
  0xe2   :  { %410 = vmatmul.mubr.f32.vlgmr.msra.gmra.mrb[0].mxu1 %v120_v56 }
 0x1b5   :  { %v411_v61 = vpop.f32.mrb[0].mxu1 }
 0x1b6   :  { %v216_v62 = vadd.f32 %v411_v61, %v328_v60  ;;  %v210_v63 = vpop.f32.mrb[1].mxu1 }
 0x1b7   :  { %v211_v0 = vadd.f32 %v328_v60, %v210_v63 }
 0x1b8   :  { %v220_v2 = vmax.f32 %v216_v62, 0.0 }
 0x1b9   :  { %v219_v1 = vmax.f32 %v211_v0, 0.0 }
 0x1bb   :  { %444 = vmatprep.mubr.f32.mxu0 %v219_v1 }
 0x1bc   :  { %445 = vmatmul.mubr.f32.vlgmr.msra.gmra.mrb[2].mxu0 %v220_v2 }
 0x28f   :  { %v446_v4 = vpop.f32.mrb[2].mxu0 }
 0x290   :  { %v316_v5 = vadd.f32 %v446_v4, %v329_v3  ;;  %v310_v6 = vpop.f32.mrb[3].mxu0 }
 0x291   :  { %v311_v7 = vadd.f32 %v329_v3, %v310_v6 }
 0x292   :  { %320 = vst [vmem:[%s687_s7 + $0x8] sm:$0xff] %v316_v5 }
 0x293   :  { %319 = vst [vmem:[%s687_s7] sm:$0xff] %v311_v7 }

</bundles_post_ra>
